<compile_context>
chip_gen: v6e
topology: v6e:2x2x1
jax: 0.10.0
libtpu: 0.0.40
codegen_flags: <defaults>
</compile_context>

<pallas_src>
import jax
import jax.numpy as jnp
from jax.experimental import pallas as pl
from jax.experimental.pallas import tpu as pltpu


def _linear_kernel(x_ref, w_ref, b_ref, o_ref):
    # x_ref: [TB, D] (VMEM, streamed)   w_ref: [1, D] (VMEM, resident)
    # b_ref: [1]     (SMEM scalar)      o_ref: [1, TB] (lane-dense)
    x = x_ref[...].astype(jnp.float32)              # bf16-friendly upcast (free under DMA)
    w = w_ref[...]                                  # [1, D], lane-dense row
    acc = jnp.sum(x * w, axis=-1)                   # VPU mul + XLU lane reduce -> [TB]
    o_ref[...] = (acc + b_ref[0])[None, :].astype(o_ref.dtype)


def _round_up(x, m):
    return ((x + m - 1) // m) * m


def _choose_tile_b(B, *, tb_max=2048, target_steps=4):
    """Batch tile: multiple of 128 (lane-dense output blocks + sublane-aligned
    x blocks), sized so the grid has ~target_steps steps, capped at tb_max."""
    if B <= 128:
        return B  # single full-extent block (block dims == array dims is allowed)
    cand = _round_up(pl.cdiv(B, target_steps), 128)
    return max(128, min(tb_max, cand))


def baseline_forward(cls_embedding, weight, bias, *, tb_max=2048):
    """Forward pass of `Baseline`.

    cls_embedding: [B, D] f32 (or bf16)
    weight:        [1, D] f32  (PyTorch nn.Linear layout: [out_features, in_features])
    bias:          [1]    f32
    returns logits [B, 1] f32
    """
    B, D = cls_embedding.shape
    assert weight.shape == (1, D)
    assert bias.shape == (1,)

    tile_b = _choose_tile_b(B, tb_max=tb_max)
    grid = (pl.cdiv(B, tile_b),)  # ragged last block handled by Pallas, no padding

    out = pl.pallas_call(
        _linear_kernel,
        out_shape=jax.ShapeDtypeStruct((1, B), jnp.float32),
        grid=grid,
        in_specs=[
            # Streamed, double-buffered batch tiles of x.
            pl.BlockSpec((tile_b, D), lambda i: (i, 0)),
            # Weight row: same block every step -> stays resident in VMEM.
            pl.BlockSpec((1, D), lambda i: (0, 0)),
            # Bias: scalar in SMEM.
            pl.BlockSpec(memory_space=pltpu.MemorySpace.SMEM),
        ],
        # Lane-dense output blocks.
        out_specs=pl.BlockSpec((1, tile_b), lambda i: (0, i)),
        compiler_params=pltpu.CompilerParams(
            # Each batch tile is independent -> shard across TCs on v7x.
            dimension_semantics=("parallel",),
            # Lift the 16 MiB (v5e) / 32 MiB (v6e, v7x) default scoped-VMEM
            # limits; peak usage at tile_b=2048 is ~25 MiB, well under
            # v7x's 64 MiB physical VMEM.
            vmem_limit_bytes=48 << 20,
        ),
    )(cls_embedding, weight, bias)

    # Module contract: logits shape [B, 1].
    return out.reshape(B, 1)


if __name__ == "__main__":
    key = jax.random.PRNGKey(0)
    k_x, k_w, k_b, k_x2 = jax.random.split(key, 4)

    D = 2 * 768  # hidden=1536 as implied by nn.Linear(2*768, 1)

    # Deterministic parameter init (uniform, like torch's default Linear init scale).
    bound = 1.0 / jnp.sqrt(jnp.float32(D))
    weight = jax.random.uniform(k_w, (1, D), jnp.float32, -bound, bound)  # [out, in]
    bias = jax.random.uniform(k_b, (1,), jnp.float32, -bound, bound)

    # Case 1: tiny batch (single full-extent block), matches the module's usage.
    B1 = 2
    x1 = jax.random.normal(k_x, (B1, D), jnp.float32)
    logits1 = baseline_forward(x1, weight, bias)
    jax.block_until_ready(logits1)
    ref1 = x1 @ weight.T + bias[None, :]
    assert logits1.shape == (B1, 1)
    assert jnp.allclose(logits1, ref1, atol=1e-4, rtol=1e-5)

    # Case 2: ragged multi-step grid (B not a tile multiple) to exercise the
    # no-pad streaming path.
    B2 = 300
    x2 = jax.random.normal(k_x2, (B2, D), jnp.float32)
    logits2 = baseline_forward(x2, weight, bias)
    jax.block_until_ready(logits2)
    ref2 = x2 @ weight.T + bias[None, :]
    assert logits2.shape == (B2, 1)
    assert jnp.allclose(logits2, ref2, atol=1e-4, rtol=1e-5)

    print("KERNEL_OK")
</pallas_src>

<mosaic_0001>
module attributes {stable_mosaic.version = 11 : i64} {
  func.func @_linear_kernel(%arg0: i32, %arg1: memref<2x1536xf32, #tpu.memory_space<vmem>>, %arg2: memref<1x1536xf32, #tpu.memory_space<vmem>>, %arg3: memref<1xf32, #tpu.memory_space<smem>>, %arg4: memref<1x2xf32, #tpu.memory_space<vmem>>) attributes {dimension_semantics = [#tpu.dimension_semantics<parallel>], iteration_bounds = array<i64: 1>, scalar_prefetch = 0 : i64, scratch_operands = 0 : i64, tpu.core_type = #tpu.core_type<tc>, window_params = [{transform_indices = @transform_0, window_bounds = array<i64: 2, 1536>}, {pipeline_mode = #tpu.pipeline_mode<synchronous>, transform_indices = @transform_1, window_bounds = array<i64: 1, 1536>}, {transform_indices = @transform_2, window_bounds = array<i64: 1>}, {transform_indices = @transform_3, window_bounds = array<i64: 1, 2>}]} {
    %c0 = arith.constant 0 : index
    %c0_0 = arith.constant 0 : index
    %0 = vector.load %arg1[%c0, %c0_0] : memref<2x1536xf32, #tpu.memory_space<vmem>>, vector<2x1536xf32>
    %c0_1 = arith.constant 0 : index
    %c0_2 = arith.constant 0 : index
    %1 = vector.load %arg2[%c0_1, %c0_2] : memref<1x1536xf32, #tpu.memory_space<vmem>>, vector<1x1536xf32>
    %2 = vector.broadcast %1 : vector<1x1536xf32> to vector<2x1536xf32>
    %3 = arith.mulf %0, %2 : vector<2x1536xf32>
    %cst = arith.constant dense<0.000000e+00> : vector<2xf32>
    %4 = vector.multi_reduction <add>, %3, %cst [1] : vector<2x1536xf32> to vector<2xf32>
    %c0_3 = arith.constant 0 : index
    %5 = memref.load %arg3[%c0_3] : memref<1xf32, #tpu.memory_space<smem>>
    %6 = vector.broadcast %5 : f32 to vector<2xf32>
    %7 = arith.addf %4, %6 : vector<2xf32>
    %8 = vector.shape_cast %7 : vector<2xf32> to vector<1x2xf32>
    %c0_4 = arith.constant 0 : index
    %c0_5 = arith.constant 0 : index
    %9 = vector.load %arg4[%c0_4, %c0_5] : memref<1x2xf32, #tpu.memory_space<vmem>>, vector<1x2xf32>
    tpu.vector_store %arg4[%c0_4, %c0_5], %8 {strides = array<i32>} : memref<1x2xf32, #tpu.memory_space<vmem>>, vector<1x2xf32>,
    return
  }
  func.func @transform_0(%arg0: i32) -> (i32, i32) {
    %c0_i32 = arith.constant 0 : i32
    %c0_i32_0 = arith.constant 0 : i32
    return %arg0, %c0_i32 : i32, i32
  }
  func.func @transform_1(%arg0: i32) -> (i32, i32) {
    %c0_i32 = arith.constant 0 : i32
    %c0_i32_0 = arith.constant 0 : i32
    %c0_i32_1 = arith.constant 0 : i32
    return %c0_i32, %c0_i32_0 : i32, i32
  }
  func.func @transform_2(%arg0: i32) -> i32 {
    %c0_i32 = arith.constant 0 : i32
    %c0_i32_0 = arith.constant 0 : i32
    return %c0_i32 : i32
  }
  func.func @transform_3(%arg0: i32) -> (i32, i32) {
    %c0_i32 = arith.constant 0 : i32
    %c0_i32_0 = arith.constant 0 : i32
    return %c0_i32, %arg0 : i32, i32
  }
}

</mosaic_0001>

<bundles_post_ra>
// kernel: tpu_custom_call.1
= control target key start
LH: loop header
LB: loop body
LE: loop exit
PB: predicated region body
PF: predicated region fallthrough
CT: control target
= control target key end

     0   :  { %9 = vsyncpa [#allocation4], 0  ;;  %s405_s0 = inlined_call_operand.hbm [shape: f32[2,1536], index: 0, kind: input, shape index: {}]   ;;  %s406_s1 = inlined_call_operand.hbm [shape: f32[1,1536], index: 1, kind: input, shape index: {}]   ;;  %s407_s2 = inlined_call_operand.<no memory space> [shape: f32[1], index: 2, kind: input, shape index: {}]   ;;  %s408_s3 = inlined_call_operand.hbm [shape: f32[1,2], index: 3, kind: output, shape index: {}]  }
   0x1   :  { %10 = vsyncpa [#allocation7], 0 }
   0x2   :  { %11 = vsyncpa [#allocation5], 0  ;;  %s343_s12 = smov [#allocation3]   ;;  %s344_s14 = smov [#allocation6]  }
   0x3   :  { %s18_s13 = sshll.u32 %s343_s12, 4  ;;  %s28_s15 = sshll.u32 %s344_s14, 4  ;;  %s19_s13 = int_to_ptr.vmem [resolvable:$true] %s18_s13  ;;  %s29_s15 = int_to_ptr.vmem [resolvable:$true] %s28_s15 }
   0x4   :  { %s285_s16 = scalar_lea.vmem %s19_s13, 384  ;;  %p290_p1 = scmp.lt.s32.totalorder %s19_s13, %s19_s13 }
   0x5   :  { %p286_p0 = scmp.ne.s32.totalorder %s19_s13, %s285_s16  ;;  %p291_p2 = scmp.lt.s32.totalorder %s285_s16, %s285_s16 }
   0x7   :  { %p292_p3 = por %p291_p2, %p290_p1 }
   0x9   :  { %p293_p4 = pnand %p292_p3, %p286_p0 }
   0xb   :  { %296 = shalt.err (!%p293_p4)
}
   0xc   :  { %21 = dma.hbm_to_vmem [thread:$0]  %s405_s0, 384, %s19_s13, [#allocation4]  }
   0xd   :  { %s305_s19 = scalar_lea.vmem %s29_s15, 192  ;;  %p310_p6 = scmp.lt.s32.totalorder %s29_s15, %s29_s15 }
   0xe   :  { %p306_p5 = scmp.ne.s32.totalorder %s29_s15, %s305_s19  ;;  %p311_p7 = scmp.lt.s32.totalorder %s305_s19, %s305_s19 }
  0x10   :  { %p312_p8 = por %p311_p7, %p310_p6 }
  0x12   :  { %p313_p9 = pnand %p312_p8, %p306_p5 }
  0x14   :  { %316 = shalt.err (!%p313_p9)
}
  0x15   :  { %31 = dma.hbm_to_vmem [thread:$0]  %s406_s1, 192, %s29_s15, [#allocation7]  }
  0x16   :  { %337 = dma.done.wait [#allocation4], 384  }
  0x17   :  { %338 = vsyncadd [#allocation4], 4294966912 }
  0x18   :  { %339 = dma.done.wait [#allocation7], 192  }
  0x19   :  { %340 = vsyncadd [#allocation7], 4294967104  ;;  %v47_v0 = vlaneseq  ;;  %v345_v1 = vmov 1983009808   ;;  %v43_v13 = vld [vmem:[#allocation6] sm:$0xff]  ;;  %v40_v38 = vld [vmem:[#allocation3] sm:$0xff] }
  0x1a   :  { %v98_v2 = vunpack.c.l.s4 %v345_v1  ;;  %v44_v14 = vld [vmem:[#allocation6 + $0x8] sm:$0xf]  ;;  %v41_v39 = vld [vmem:[#allocation3 + $0x8] sm:$0xff]  ;;  %vm218_vm0 = vcmask 1041408   ;;  %v42_v53 = vld [vmem:[#allocation3 + $0x10] sm:$0xff]  ;;  %s346_s22 = smov [#allocation8]  }
  0x1b   :  { %v374_v3 = vshrl.u32 %v47_v0, 7  ;;  %s263_s23 = sshll.u32 %s346_s22, 4  ;;  %vm255_vm1 = vcmask 8192   ;;  %s264_s23 = int_to_ptr.vmem [resolvable:$true] %s263_s23 }
  0x1c   :  { %v99_v4 = vunpack.c.0.s8 %v98_v2  ;;  %s317_s24 = scalar_lea.vmem %s264_s23, 16  ;;  %s321_s25 = scalar_lea.vmem %s264_s23, 32 }
  0x1d   :  { %v49_v5 = vsub.s32 0, %v374_v3  ;;  %v53_v6 = vsub.s32 1, %v374_v3  ;;  %v57_v7 = vsub.s32 2, %v374_v3  ;;  %v61_v8 = vsub.s32 3, %v374_v3  ;;  %p318_p10 = scmp.ne.s32.totalorder %s264_s23, %s317_s24  ;;  %p322_p11 = scmp.lt.s32.totalorder %s264_s23, %s264_s23 }
  0x1e   :  { %v65_v9 = vsub.s32 4, %v374_v3  ;;  %v69_v10 = vsub.s32 5, %v374_v3  ;;  %v73_v11 = vsub.s32 6, %v374_v3  ;;  %v77_v12 = vsub.s32 7, %v374_v3  ;;  %p323_p12 = scmp.lt.s32.totalorder %s321_s25, %s317_s24 }
  0x1f   :  { %v102_v15 = vsub.s32 %v99_v4, %v374_v3  ;;  %v50_v16 = vrot.slane %v43_v13, %v49_v5  ;;  %v54_v17 = vrot.slane %v43_v13, %v53_v6  ;;  %v58_v18 = vrot.slane %v43_v13, %v57_v7 }
  0x20   :  { %v62_v19 = vrot.slane %v43_v13, %v61_v8  ;;  %v66_v20 = vrot.slane %v43_v13, %v65_v9  ;;  %v70_v21 = vrot.slane %v43_v13, %v69_v10  ;;  %v74_v22 = vrot.slane %v43_v13, %v73_v11  ;;  %p324_p13 = por %p323_p12, %p322_p11 }
  0x21   :  { %v78_v23 = vrot.slane %v43_v13, %v77_v12  ;;  %v82_v24 = vrot.slane %v44_v14, %v49_v5  ;;  %v86_v25 = vrot.slane %v44_v14, %v53_v6  ;;  %v90_v26 = vrot.slane %v44_v14, %v57_v7 }
  0x22   :  { %v94_v27 = vrot.slane %v44_v14, %v61_v8  ;;  %v95_v28 = vcombine.low %v50_v16, %v54_v17  ;;  %v96_v29 = vcombine.low %v58_v18, %v62_v19  ;;  %v112_v30 = vcombine.low %v66_v20, %v70_v21  ;;  %p325_p0 = pnand %p324_p13, %p318_p10 }
  0x23   :  { %v113_v31 = vcombine.low %v74_v22, %v78_v23  ;;  %v129_v32 = vcombine.low %v82_v24, %v86_v25 }
  0x24   :  { %v130_v33 = vcombine.low %v90_v26, %v94_v27  ;;  %v103_v34 = vrot.slane %v95_v28, %v102_v15  ;;  %v110_v35 = vrot.slane %v96_v29, %v102_v15  ;;  %v120_v36 = vrot.slane %v112_v30, %v102_v15 }
  0x25   :  { %v127_v37 = vrot.slane %v113_v31, %v102_v15  ;;  %v137_v42 = vrot.slane %v129_v32, %v102_v15  ;;  %v245_v27 = vstv %s407_s2 }
  0x26   :  { %v111_v40 = vcombine.low %v103_v34, %v110_v35  ;;  %v144_v43 = vrot.slane %v130_v33, %v102_v15 }
  0x27   :  { %v128_v41 = vcombine.low %v120_v36, %v127_v37 }
  0x28   :  { %v149_v44 = vmul.f32 %v111_v40, %v40_v38  ;;  %v145_v48 = vcombine.low %v137_v42, %v144_v43 }
  0x29   :  { %v150_v45 = vmul.f32 %v128_v41, %v41_v39 }
  0x2a   :  { %v155_v46 = vcombine.high %v149_v44, %v149_v44  ;;  %v162_v47 = vrot.slane %v149_v44, %v102_v15  ;;  %v151_v59 = vmul.f32 %v145_v48, %v42_v53 }
  0x2b   :  { %v172_v51 = vcombine.high %v150_v45, %v150_v45  ;;  %v179_v52 = vrot.slane %v150_v45, %v102_v15 }
  0x2c   :  { %v169_v49 = vrot.slane %v155_v46, %v102_v15  ;;  %v170_v50 = vcombine.high %v162_v47, %v162_v47  ;;  %v219_v54 = vsel %vm218_vm0, %v162_v47, 0.0  ;;  %v189_v5 = vcombine.high %v151_v59, %v151_v59 }
  0x2d   :  { %v186_v60 = vrot.slane %v172_v51, %v102_v15  ;;  %v187_v61 = vcombine.high %v179_v52, %v179_v52  ;;  %v226_v1 = vsel %vm218_vm0, %v179_v52, 0.0  ;;  %v196_v6 = vrot.slane %v151_v59, %v102_v15 }
  0x2e   :  { %v171_v55 = vcombine.high %v169_v49, %v169_v49  ;;  %v220_v56 = vsel %vm218_vm0, %v170_v50, 0.0  ;;  %v222_v57 = vsel %vm218_vm0, %v169_v49, 0.0  ;;  %v203_v11 = vrot.slane %v189_v5, %v102_v15 }
  0x2f   :  { %v221_v58 = vadd.f32 %v220_v56, %v219_v54  ;;  %v188_v4 = vcombine.high %v186_v60, %v186_v60  ;;  %v228_v7 = vsel %vm218_vm0, %v187_v61, 0.0  ;;  %v230_v9 = vsel %vm218_vm0, %v186_v60, 0.0 }
  0x30   :  { %v224_v62 = vsel %vm218_vm0, %v171_v55, 0.0  ;;  %v204_v12 = vcombine.high %v196_v6, %v196_v6  ;;  %v234_v16 = vsel %vm218_vm0, %v196_v6, 0.0  ;;  %v205_v18 = vcombine.high %v203_v11, %v203_v11 }
  0x31   :  { %v223_v63 = vadd.f32 %v222_v57, %v221_v58  ;;  %v232_v13 = vsel %vm218_vm0, %v188_v4, 0.0  ;;  %v238_v21 = vsel %vm218_vm0, %v203_v11, 0.0  ;;  %v249_v15 = vand.u32 127, %v47_v0 }
  0x32   :  { %v236_v19 = vsel %vm218_vm0, %v204_v12, 0.0  ;;  %v240_v23 = vsel %vm218_vm0, %v205_v18, 0.0 }
  0x33   :  { %v225_v2 = vadd.f32 %v224_v62, %v223_v63  ;;  %v252_v26 = vsub.s32 %v249_v15, %v374_v3 }
  0x35   :  { %v227_v8 = vadd.f32 %v226_v1, %v225_v2 }
  0x37   :  { %v229_v10 = vadd.f32 %v228_v7, %v227_v8 }
  0x39   :  { %v231_v14 = vadd.f32 %v230_v9, %v229_v10 }
  0x3b   :  { %v233_v17 = vadd.f32 %v232_v13, %v231_v14 }
  0x3d   :  { %v235_v20 = vadd.f32 %v234_v16, %v233_v17 }
  0x3f   :  { %v237_v22 = vadd.f32 %v236_v19, %v235_v20 }
  0x41   :  { %v239_v24 = vadd.f32 %v238_v21, %v237_v22 }
  0x43   :  { %v241_v25 = vadd.f32 %v240_v23, %v239_v24 }
  0x45   :  { %242 = vadd.xlane.f32.xlu0 %v241_v25 }
  0xce   :  { %v243_v28 = vpop.xlane.xlu0 %242 }
  0xcf   :  { %v246_v29 = vadd.f32 %v245_v27, %v243_v28 }
  0xd1   :  { %v253_v30 = vrot.slane %v246_v29, %v252_v26 }
  0xd3   :  { %256 = vst.msk [vmem:[#allocation8] sm:$0x1] %vm255_vm1, %v253_v30 }
  0xd4   :  { %328 = shalt.err (!%p325_p0)
}
  0xd5   :  { %266 = dma.vmem_to_hbm [thread:$0]  %s264_s23, 16, %s408_s3, [#allocation5]  }
  0xd6   :  { %341 = dma.done.wait [#allocation5], 16  }
  0xd7   :  { %342 = vsyncadd [#allocation5], 4294967280 }
  0xd8   :  { %270 = vsyncpa [#allocation4], 1 }
  0xd9   :  { %271 = vsyncpa [#allocation7], 1 }
  0xda   :  { %272 = vsyncpa [#allocation5], 1 }

</bundles_post_ra>
